<compile_context>
chip_gen: v6e
topology: v6e:2x2x1
jax: 0.10.0
libtpu: 0.0.40
codegen_flags: <defaults>
</compile_context>

<pallas_src>
import functools

import jax
import jax.numpy as jnp
from jax.experimental import pallas as pl
from jax.experimental.pallas import tpu as pltpu

LANE = 128
SUBLANE = 8


def _max_block_rows():
    # (block_rows, 128) f32 = block_rows * 512 B per input per pipeline buffer.
    # 2048 rows -> 1 MiB/input/buffer -> ~4 MiB double-buffered: inside the
    # default scoped-VMEM limit on v5e/v6e/v7x.  v7x has ~3.2 TB/s HBM, so use a
    # larger tile there to amortize the per-grid-step overhead.
    try:
        kind = jax.devices()[0].device_kind.lower()
    except Exception:
        kind = ""
    return 4096 if "v7" in kind else 2048


def _bce_kernel(o_ref, t_ref, out_ref, acc_ref, *, blocks_per_core, total_blocks,
                block_rows, ragged_rows, binary_targets):
    c = pl.program_id(0)   # TensorCore index ("parallel" axis)
    j = pl.program_id(1)   # per-core streaming step ("arbitrary" axis)

    # Core c walks blocks c*(total_blocks-bpc) + j; the two ranges overlap by
    # `overlap` (0 or 1) blocks in the middle, which core 1 skips so nothing is
    # double counted and no block index ever goes out of bounds.
    overlap = 2 * blocks_per_core - total_blocks            # static: 0 or 1
    block_idx = c * (total_blocks - blocks_per_core) + j

    @pl.when(j == 0)
    def _():
        acc_ref[...] = jnp.zeros_like(acc_ref)

    def accumulate(o, t):
        # Accumulate +(t*log(o) + (1-t)*log(1-o)); the negate and the mean's 1/n
        # are folded into the tiny wrapper-side reduction.
        if binary_targets:
            # Hard 0/1 targets: a single log per element (halves EUP pushes).
            p = jnp.where(t > jnp.float32(0.5), o, jnp.float32(1.0) - o)
            val = jnp.maximum(jnp.log(p), jnp.float32(-100.0))
        else:
            log_o = jnp.maximum(jnp.log(o), jnp.float32(-100.0))
            log_1mo = jnp.maximum(jnp.log(jnp.float32(1.0) - o), jnp.float32(-100.0))
            val = log_1mo + t * (log_o - log_1mo)
        # Reduce the (block_rows, 128) tile to one vreg-sized (8, 128) partial
        # with pure-VPU vreg adds; only a single vreg is RMW'd per step.
        partial = jnp.sum(val.reshape(block_rows // SUBLANE, SUBLANE, LANE), axis=0)
        acc_ref[...] += partial

    def load():
        return (o_ref[...].astype(jnp.float32), t_ref[...].astype(jnp.float32))

    is_last_block = block_idx == total_blocks - 1
    if overlap > 0:
        process = jnp.logical_or(c == 0, j >= overlap)       # skip duplicate block
    else:
        process = None                                        # statically always run

    if ragged_rows != block_rows:
        # The final block is ragged: rows >= ragged_rows hold DMA padding
        # (undefined values).  Select the zero-loss pair (o=1, t=1) for them
        # BEFORE the logs so garbage can never turn into NaN.
        cond_plain = jnp.logical_not(is_last_block)
        cond_mask = is_last_block
        if process is not None:
            cond_plain = jnp.logical_and(process, cond_plain)
            cond_mask = jnp.logical_and(process, cond_mask)

        @pl.when(cond_plain)
        def _():
            accumulate(*load())

        @pl.when(cond_mask)
        def _():
            o, t = load()
            row = jax.lax.broadcasted_iota(jnp.int32, (block_rows, LANE), 0)
            in_bounds = row < ragged_rows
            o = jnp.where(in_bounds, o, jnp.float32(1.0))
            t = jnp.where(in_bounds, t, jnp.float32(1.0))
            accumulate(o, t)
    else:
        if process is not None:
            @pl.when(process)
            def _():
                accumulate(*load())
        else:
            accumulate(*load())

    @pl.when(j == blocks_per_core - 1)
    def _():
        out_ref[...] = acc_ref[...]


def my_cross_entropy(output, target, *, binary_targets=False):
    """BCELoss(reduction='mean') — returns a float32 scalar.

    binary_targets=True enables a one-log-per-element fast path; only valid when
    targets are exactly 0/1 (the default two-log path handles soft targets).
    """
    assert output.shape == target.shape
    n = int(output.size)
    assert n > 0

    o_flat = output.reshape(-1)
    t_flat = target.reshape(-1)

    def _pad(x, count):
        # Zero-loss pair (o=1, t=1): contributes exactly 0 (clamp prevents 0*inf).
        return jnp.concatenate([x, jnp.ones((count,), x.dtype)])

    # Pad only up to a 128-lane multiple (needed for the 2-D view); the ragged
    # last *block* is masked inside the kernel, so no full-block-size copies.
    rem = n % LANE
    if rem:
        o_flat = _pad(o_flat, LANE - rem)
        t_flat = _pad(t_flat, LANE - rem)
    rows = o_flat.shape[0] // LANE

    if rows >= SUBLANE:
        block_rows = min(_max_block_rows(), (rows // SUBLANE) * SUBLANE)
    else:
        # Tiny input: pad up to one (8, 128) tile (negligible copy).
        pad_rows = SUBLANE - rows
        o_flat = _pad(o_flat, pad_rows * LANE)
        t_flat = _pad(t_flat, pad_rows * LANE)
        rows = SUBLANE
        block_rows = SUBLANE

    o2 = o_flat.reshape(rows, LANE)
    t2 = t_flat.reshape(rows, LANE)

    total_blocks = -(-rows // block_rows)
    blocks_per_core = -(-total_blocks // 2)
    ragged_rows = rows - (total_blocks - 1) * block_rows

    kernel = functools.partial(
        _bce_kernel,
        blocks_per_core=blocks_per_core,
        total_blocks=total_blocks,
        block_rows=block_rows,
        ragged_rows=ragged_rows,
        binary_targets=binary_targets,
    )

    def in_map(c, j):
        return (c * (total_blocks - blocks_per_core) + j, 0)

    partials = pl.pallas_call(
        kernel,
        out_shape=jax.ShapeDtypeStruct((2 * SUBLANE, LANE), jnp.float32),
        grid_spec=pltpu.PrefetchScalarGridSpec(
            num_scalar_prefetch=0,
            grid=(2, blocks_per_core),
            in_specs=[
                pl.BlockSpec((block_rows, LANE), in_map),
                pl.BlockSpec((block_rows, LANE), in_map),
            ],
            out_specs=pl.BlockSpec((SUBLANE, LANE), lambda c, j: (c, 0)),
            scratch_shapes=[pltpu.VMEM((SUBLANE, LANE), jnp.float32)],
        ),
        compiler_params=pltpu.CompilerParams(
            dimension_semantics=("parallel", "arbitrary")),
    )(o2, t2)

    # Fold the negate and the mean's 1/n into one tiny wrapper-side reduction
    # over the 2 per-core (8, 128) partials.
    return jnp.sum(partials) * jnp.float32(-1.0 / n)


def _bce_ref(output, target):
    o = output.astype(jnp.float32)
    t = target.astype(jnp.float32)
    log_o = jnp.maximum(jnp.log(o), -100.0)
    log_1mo = jnp.maximum(jnp.log(1.0 - o), -100.0)
    return jnp.mean(-(t * log_o + (1.0 - t) * log_1mo))


if __name__ == "__main__":
    key = jax.random.PRNGKey(0)
    k_o, k_t, k_o2, k_t2 = jax.random.split(key, 4)

    # Case 1: small NCHW probabilities with hard binary targets (lane-aligned n).
    shape = (2, 4, 16, 16)
    output = jax.nn.sigmoid(jax.random.normal(k_o, shape, dtype=jnp.float32))
    target = (jax.random.uniform(k_t, shape) > 0.5).astype(jnp.float32)

    loss = my_cross_entropy(output, target)
    jax.block_until_ready(loss)
    ref = _bce_ref(output, target)
    assert jnp.allclose(loss, ref, rtol=1e-5, atol=1e-5), (loss, ref)

    # Hard-binary fast path (single log per element) on the same data.
    loss_bin = my_cross_entropy(output, target, binary_targets=True)
    jax.block_until_ready(loss_bin)
    assert jnp.allclose(loss_bin, ref, rtol=1e-5, atol=1e-5), (loss_bin, ref)

    # Case 2: ragged (non-128-aligned) size with soft targets — exercises the
    # in-kernel tail-masking path.
    shape2 = (3, 5, 7, 11)
    output2 = jax.nn.sigmoid(jax.random.normal(k_o2, shape2, dtype=jnp.float32))
    target2 = jax.random.uniform(k_t2, shape2, dtype=jnp.float32)
    loss2 = my_cross_entropy(output2, target2)
    jax.block_until_ready(loss2)
    ref2 = _bce_ref(output2, target2)
    assert jnp.allclose(loss2, ref2, rtol=1e-5, atol=1e-5), (loss2, ref2)

    print("KERNEL_OK")
</pallas_src>

<mosaic_0001>
module attributes {stable_mosaic.version = 11 : i64} {
  func.func @_bce_kernel(%arg0: i32, %arg1: i32, %arg2: memref<16x128xf32, #tpu.memory_space<vmem>>, %arg3: memref<16x128xf32, #tpu.memory_space<vmem>>, %arg4: memref<8x128xf32, #tpu.memory_space<vmem>>, %arg5: memref<8x128xf32, #tpu.memory_space<vmem>>) attributes {dimension_semantics = [#tpu.dimension_semantics<parallel>, #tpu.dimension_semantics<arbitrary>], iteration_bounds = array<i64: 2, 1>, scalar_prefetch = 0 : i64, scratch_operands = 1 : i64, tpu.core_type = #tpu.core_type<tc>, window_params = [{transform_indices = @transform_0, window_bounds = array<i64: 16, 128>}, {transform_indices = @transform_1, window_bounds = array<i64: 16, 128>}, {transform_indices = @transform_2, window_bounds = array<i64: 8, 128>}]} {
    %c0_i32 = arith.constant 0 : i32
    %0 = arith.cmpi eq, %arg1, %c0_i32 : i32
    %1 = arith.extui %0 : i1 to i32
    %c0_i32_0 = arith.constant 0 : i32
    %2 = arith.cmpi ne, %1, %c0_i32_0 : i32
    scf.if %2 {
      %cst = arith.constant 0.000000e+00 : f32
      %11 = vector.broadcast %cst : f32 to vector<8x128xf32>
      %c0 = arith.constant 0 : index
      %c0_5 = arith.constant 0 : index
      %12 = vector.load %arg5[%c0, %c0_5] : memref<8x128xf32, #tpu.memory_space<vmem>>, vector<8x128xf32>
      tpu.vector_store %arg5[%c0, %c0_5], %11 {strides = array<i32>} : memref<8x128xf32, #tpu.memory_space<vmem>>, vector<8x128xf32>,
    } else {
    }
    %c0_i32_1 = arith.constant 0 : i32
    %3 = arith.cmpi eq, %arg0, %c0_i32_1 : i32
    %c1_i32 = arith.constant 1 : i32
    %4 = arith.cmpi sge, %arg1, %c1_i32 : i32
    %5 = arith.ori %3, %4 : i1
    %6 = arith.extui %5 : i1 to i32
    %c0_i32_2 = arith.constant 0 : i32
    %7 = arith.cmpi ne, %6, %c0_i32_2 : i32
    scf.if %7 {
      %c0 = arith.constant 0 : index
      %c0_5 = arith.constant 0 : index
      %11 = vector.load %arg2[%c0, %c0_5] : memref<16x128xf32, #tpu.memory_space<vmem>>, vector<16x128xf32>
      %c0_6 = arith.constant 0 : index
      %c0_7 = arith.constant 0 : index
      %12 = vector.load %arg3[%c0_6, %c0_7] : memref<16x128xf32, #tpu.memory_space<vmem>>, vector<16x128xf32>
      %13 = math.log %11 : vector<16x128xf32>
      %cst = arith.constant -1.000000e+02 : f32
      %14 = vector.broadcast %cst : f32 to vector<16x128xf32>
      %15 = arith.maximumf %13, %14 : vector<16x128xf32>
      %cst_8 = arith.constant 1.000000e+00 : f32
      %16 = vector.broadcast %cst_8 : f32 to vector<16x128xf32>
      %17 = arith.subf %16, %11 : vector<16x128xf32>
      %18 = math.log %17 : vector<16x128xf32>
      %cst_9 = arith.constant -1.000000e+02 : f32
      %19 = vector.broadcast %cst_9 : f32 to vector<16x128xf32>
      %20 = arith.maximumf %18, %19 : vector<16x128xf32>
      %21 = arith.subf %15, %20 : vector<16x128xf32>
      %22 = arith.mulf %12, %21 : vector<16x128xf32>
      %23 = arith.addf %20, %22 : vector<16x128xf32>
      %24 = vector.shape_cast %23 : vector<16x128xf32> to vector<2x8x128xf32>
      %cst_10 = arith.constant dense<0.000000e+00> : vector<8x128xf32>
      %25 = vector.multi_reduction <add>, %24, %cst_10 [0] : vector<2x8x128xf32> to vector<8x128xf32>
      %c0_11 = arith.constant 0 : index
      %c0_12 = arith.constant 0 : index
      %26 = vector.load %arg5[%c0_11, %c0_12] : memref<8x128xf32, #tpu.memory_space<vmem>>, vector<8x128xf32>
      %27 = arith.addf %26, %25 : vector<8x128xf32>
      %c0_13 = arith.constant 0 : index
      %c0_14 = arith.constant 0 : index
      %28 = vector.load %arg5[%c0_13, %c0_14] : memref<8x128xf32, #tpu.memory_space<vmem>>, vector<8x128xf32>
      tpu.vector_store %arg5[%c0_13, %c0_14], %27 {strides = array<i32>} : memref<8x128xf32, #tpu.memory_space<vmem>>, vector<8x128xf32>,
    } else {
    }
    %c0_i32_3 = arith.constant 0 : i32
    %8 = arith.cmpi eq, %arg1, %c0_i32_3 : i32
    %9 = arith.extui %8 : i1 to i32
    %c0_i32_4 = arith.constant 0 : i32
    %10 = arith.cmpi ne, %9, %c0_i32_4 : i32
    scf.if %10 {
      %c0 = arith.constant 0 : index
      %c0_5 = arith.constant 0 : index
      %11 = vector.load %arg5[%c0, %c0_5] : memref<8x128xf32, #tpu.memory_space<vmem>>, vector<8x128xf32>
      %c0_6 = arith.constant 0 : index
      %c0_7 = arith.constant 0 : index
      %12 = vector.load %arg4[%c0_6, %c0_7] : memref<8x128xf32, #tpu.memory_space<vmem>>, vector<8x128xf32>
      tpu.vector_store %arg4[%c0_6, %c0_7], %11 {strides = array<i32>} : memref<8x128xf32, #tpu.memory_space<vmem>>, vector<8x128xf32>,
    } else {
    }
    return
  }
  func.func @transform_0(%arg0: i32, %arg1: i32) -> (i32, i32) {
    %c0_i32 = arith.constant 0 : i32
    %0 = arith.muli %arg0, %c0_i32 : i32
    %1 = arith.addi %0, %arg1 : i32
    %c0_i32_0 = arith.constant 0 : i32
    %c0_i32_1 = arith.constant 0 : i32
    return %1, %c0_i32_0 : i32, i32
  }
  func.func @transform_1(%arg0: i32, %arg1: i32) -> (i32, i32) {
    %c0_i32 = arith.constant 0 : i32
    %0 = arith.muli %arg0, %c0_i32 : i32
    %1 = arith.addi %0, %arg1 : i32
    %c0_i32_0 = arith.constant 0 : i32
    %c0_i32_1 = arith.constant 0 : i32
    return %1, %c0_i32_0 : i32, i32
  }
  func.func @transform_2(%arg0: i32, %arg1: i32) -> (i32, i32) {
    %c0_i32 = arith.constant 0 : i32
    %c0_i32_0 = arith.constant 0 : i32
    return %arg0, %c0_i32 : i32, i32
  }
}

</mosaic_0001>

<bundles_post_ra>
// kernel: tpu_custom_call.1
= control target key start
LH: loop header
LB: loop body
LE: loop exit
PB: predicated region body
PF: predicated region fallthrough
CT: control target
= control target key end

     0   :  { %7 = vsyncpa [#allocation4], 0  ;;  %s731_s0 = inlined_call_operand.hbm [shape: f32[16,128], index: 0, kind: input, shape index: {}]   ;;  %s732_s1 = inlined_call_operand.hbm [shape: f32[16,128], index: 1, kind: input, shape index: {}]   ;;  %s733_s2 = inlined_call_operand.hbm [shape: f32[16,128], index: 2, kind: output, shape index: {}]  }
   0x1   :  { %8 = vsyncpa [#allocation7], 0 }
   0x2   :  { %9 = vsyncpa [#allocation5], 0 }
   0x3   :  { %11 = vsyncpa [#allocation5 + $0x1], 0  ;;  %s581_s9 = smov 0   ;;  %s583_s10 = smov 0  }
   0x4   :  { %s585_s11 = smov 0   ;;  %s587_s12 = smov 0  }
   0x5   :  { %s589_s13 = smov 0   ;;  %s591_s14 = smov 0  }
   0x6 LB: > { %s321_s15 = sadd.s32 4294967295, %s558_s14   ;;  %s322_s16 = sadd.s32 4294967294, %s558_s14   ;;  %s558_s14 = sphi %s591_s14, %s17_s14   ;;  %s554_s13 = sphi %s589_s13, %s746_s13   ;;  %s550_s12 = sphi %s587_s12, %s745_s12   ;;  %s546_s11 = sphi %s585_s11, %s744_s11   ;;  %s542_s10 = sphi %s583_s10, %s743_s10   ;;  %s538_s9 = sphi %s581_s9, %s742_s9  }
   0x7   : > { %s29_s17 = sadd.s32 1, %s554_s13  ;;  %s88_s18 = sadd.s32 1, %s546_s11 }
   0x8   : > { %p31_p0 = scmp.ge.s32.totalorder %s29_s17, 2  ;;  %p98_p1 = scmp.ne.s32.totalorder %s546_s11, %s542_s10 }
   0x9   : > { %p99_p2 = scmp.eq.s32.totalorder %s321_s15, 1  ;;  %p104_p3 = scmp.ne.s32.totalorder %s542_s10, %s538_s9 }
   0xa   : > { %s748_s17 = smov (%p31_p0, %s29_s17), 0  ;;  %p105_p5 = scmp.eq.s32.totalorder %s322_s16, 1 }
   0xb   : > { %p621_p4 = por %p99_p2, %p98_p1  ;;  %s85_s20 = ssub.s32 %s554_s13, %s748_s17 }
   0xc   : > { %p323_p6 = scmp.ge.s32.totalorder %s558_s14, 1  ;;  %p86_p7 = scmp.eq.s32.totalorder %s85_s20, 0 }
   0xd   : > { %s735_s19 = scalar_select %p621_p4, 1, 0 }
   0xe   : > { %p628_p8 = por %p105_p5, %p104_p3  ;;  %p112_p9 = scmp.lt.s32.totalorder %s558_s14, 3 }
   0xf   : > { %s634_s22 = scalar_select %p86_p7, %s546_s11, %s88_s18  }
  0x10   : > { %s736_s21 = scalar_select %p628_p8, 1, 0 }
  0x11   : > { %p636_p10 = pnand %p323_p6, %p112_p9  ;;  %p640_p11 = scmp.eq.s32.totalorder %s321_s15, 0 }
  0x12   : > { %s560_s25 = smov [#allocation3]   ;;  %s561_s28 = smov [#allocation6]  }
  0x13   : > { %p345_p12 = pneg %p636_p10  ;;  %s127_s26 = sshll.u32 %s560_s25, 4  ;;  %s128_s26 = int_to_ptr.vmem [resolvable:$true] %s127_s26 }
  0x14   : > { %s143_s29 = sshll.u32 %s561_s28, 4  ;;  %s433_s30 = scalar_lea.vmem %s128_s26, 256  ;;  %s144_s29 = int_to_ptr.vmem [resolvable:$true] %s143_s29 }
  0x15   : > { %p648_p13 = pnand %p640_p11, %p345_p12  ;;  %p434_p1 = scmp.ne.s32.totalorder %s128_s26, %s433_s30 }
  0x16   : > { %p441_p5 = scmp.lt.s32.totalorder %s128_s26, %s128_s26  ;;  %p442_p6 = scmp.lt.s32.totalorder %s433_s30, %s433_s30 }
  0x17   : > { %p424_p0 = pneg %p648_p13 }
  0x18   : > { %p443_p7 = por %p442_p6, %p441_p5 }
  0x19   : > { %p436_p2 = pnand %p434_p1, %p424_p0 }
  0x1b   : > { %p437_p3 = pneg %p436_p2 }
  0x1d   : > { %p444_p9 = pnand %p443_p7, %p437_p3 }
  0x1f   : > { %447 = shalt.err (!%p444_p9)
}
  0x20   : > { %s562_s3 = smov 128   ;;  %s563_s4 = smov 8  }
  0x21   : > { %348 = dma.hbm_to_vmem [thread:$0]  (!%p648_p13), %s731_s0, 256, %s128_s26, [#allocation4], %s562_s3, %s562_s3, %s563_s4  }
  0x22   : > { %s459_s7 = scalar_lea.vmem %s144_s29, 256  ;;  %p467_p8 = scmp.lt.s32.totalorder %s144_s29, %s144_s29 }
  0x23   : > { %p460_p12 = scmp.ne.s32.totalorder %s144_s29, %s459_s7  ;;  %p468_p4 = scmp.lt.s32.totalorder %s459_s7, %s459_s7 }
  0x25   : > { %p462_p1 = pnand %p460_p12, %p424_p0  ;;  %p469_p5 = por %p468_p4, %p467_p8 }
  0x27   : > { %p463_p2 = pneg %p462_p1 }
  0x29   : > { %p470_p3 = pnand %p469_p5, %p463_p2 }
  0x2b   : > { %473 = shalt.err (!%p470_p3)
}
  0x2c   : > { %351 = dma.hbm_to_vmem [thread:$0]  (!%p648_p13), %s732_s1, 256, %s144_s29, [#allocation7], %s562_s3, %s562_s3, %s563_s4  }
  0x2d   : > { %159 = sbr.rel (%p636_p10) target bundleno = 117 (0x75), region = 28 }
  0x32   : > { %525 = dma.done.wait (%p640_p11), [#allocation4], 256  }
  0x33   : > { %527 = vsyncadd (%p640_p11), [#allocation4], 4294967040 }
  0x34   : > { %529 = dma.done.wait (%p640_p11), [#allocation7], 256  }
  0x35   : > { %531 = vsyncadd (%p640_p11), [#allocation7], 4294967040  ;;  %s177_s16 = sand.u32 1, %s542_s10   ;;  %v564_v0 = vmov 0.0   ;;  %p330_p4 = scmp.ne.s32.totalorder %s550_s12, 0 }
  0x36   : > { %s683_s18 = sshll.u32 %s177_s16, 3  ;;  %186 = vst [vmem:[#allocation2] sm:$0xff] %v564_v0 }
  0x37   : > { %s179_s20 = scalar_lea.vmem [#allocation8], %s683_s18  ;;  %192 = sbr.rel (%p330_p4) target bundleno = 93 (0x5d), region = 44 }
  0x3c   : > { %v193_v1 = vld [vmem:[#allocation3] sm:$0xff]  ;;  %v194_v2 = vld [vmem:[#allocation3 + $0x8] sm:$0xff]  ;;  %v195_v16 = vld [vmem:[#allocation6] sm:$0xff] }
  0x3d   : > { %414 = vlog2.f32 %v193_v1  ;;  %v203_v3 = vsub.f32 1.0, %v193_v1  ;;  %v204_v4 = vsub.f32 1.0, %v194_v2  ;;  %v196_v18 = vld [vmem:[#allocation6 + $0x8] sm:$0xff] }
  0x3e   : > { %416 = vlog2.f32 %v194_v2  ;;  %v218_v25 = vld [vmem:[#allocation2] sm:$0xff] }
  0x3f   : > { %418 = vlog2.f32 %v203_v3 }
  0x40   : > { %420 = vlog2.f32 %v204_v4 }
  0x4a   : > { %v415_v5 = vpop.eup %414 }
  0x4b   : > { %v417_v6 = vpop.eup %416  ;;  %v198_v7 = vmul.f32 0.6931472, %v415_v5 }
  0x4c   : > { %v419_v8 = vpop.eup %418  ;;  %v200_v9 = vmul.f32 0.6931472, %v417_v6 }
  0x4d   : > { %v421_v10 = vpop.eup %420  ;;  %v201_v11 = vmax.f32 %v198_v7, -100.0  ;;  %v206_v12 = vmul.f32 0.6931472, %v419_v8 }
  0x4e   : > { %v202_v13 = vmax.f32 %v200_v9, -100.0  ;;  %v208_v14 = vmul.f32 0.6931472, %v421_v10 }
  0x4f   : > { %v209_v15 = vmax.f32 %v206_v12, -100.0 }
  0x50   : > { %v210_v17 = vmax.f32 %v208_v14, -100.0 }
  0x51   : > { %v211_v19 = vsub.f32 %v201_v11, %v209_v15 }
  0x52   : > { %v212_v20 = vsub.f32 %v202_v13, %v210_v17 }
  0x53   : > { %v213_v21 = vmul.f32 %v211_v19, %v195_v16 }
  0x54   : > { %v214_v22 = vmul.f32 %v212_v20, %v196_v18 }
  0x55   : > { %v215_v23 = vadd.f32 %v213_v21, %v209_v15 }
  0x56   : > { %v216_v24 = vadd.f32 %v214_v22, %v210_v17 }
  0x58   : > { %v217_v26 = vadd.f32 %v216_v24, %v215_v23 }
  0x5a   : > { %v219_v27 = vadd.f32 %v218_v25, %v217_v26 }
  0x5c   : > { %220 = vst [vmem:[#allocation2] sm:$0xff] %v219_v27 }
  0x5d PF: > { %s332_s23 = sshll.u32 %s550_s12, 7  ;;  %s240_s27 = sshll.u32 %s179_s20, 4  ;;  %s241_s27 = int_to_ptr.vmem [resolvable:$true] %s240_s27 }
  0x5e   : > { %s238_s26 = scalar_lea.hbm %s733_s2, %s332_s23  ;;  %s227_s28 = scalar_lea.sflag [#allocation5], %s177_s16 }
  0x5f   : > { %s474_s29 = scalar_lea.vmem %s241_s27, 128  ;;  %p740_p10 = scmp.ne.s32.totalorder %s735_s19, 0 }
  0x60   : > { %p475_p8 = scmp.ne.s32.totalorder %s241_s27, %s474_s29  ;;  %s565_s30 = smov [#allocation8]  }
  0x61   : > { %s478_s3 = sshll.u32 %s565_s30, 4  ;;  %s479_s3 = int_to_ptr.vmem [resolvable:$false] %s478_s3 }
  0x62   : > { %p476_p11 = pnand %p475_p8, %p740_p10  ;;  %s480_s12 = scalar_lea.vmem %s479_s3, 256 }
  0x63   : > { %v224_v28 = vld [vmem:[#allocation2] sm:$0xff]  ;;  %p481_p0 = scmp.lt.s32.totalorder %s241_s27, %s479_s3  ;;  %p482_p6 = scmp.lt.s32.totalorder %s480_s12, %s474_s29 }
  0x64   : > { %225 = vst [vmem:[%s179_s20] sm:$0xff] %v224_v28  ;;  %p477_p13 = pneg %p476_p11 }
  0x65   : > { %p483_p7 = por %p482_p6, %p481_p0 }
  0x67   : > { %p484_p9 = pnand %p483_p7, %p477_p13 }
  0x69   : > { %487 = shalt.err (!%p484_p9)
}
  0x6a   : > { %s488_s4 = scalar_lea.hbm %s238_s26, 128  ;;  %s492_s7 = scalar_lea.hbm %s733_s2, 256 }
  0x6b   : > { %p489_p12 = scmp.ne.s32.totalorder %s238_s26, %s488_s4  ;;  %p493_p5 = scmp.lt.s32.totalorder %s238_s26, %s733_s2 }
  0x6c   : > { %p494_p3 = scmp.lt.s32.totalorder %s492_s7, %s488_s4 }
  0x6d   : > { %p490_p1 = pnand %p489_p12, %p740_p10 }
  0x6e   : > { %p495_p4 = por %p494_p3, %p493_p5 }
  0x6f   : > { %p491_p2 = pneg %p490_p1 }
  0x71   : > { %p496_p8 = pnand %p495_p4, %p491_p2 }
  0x73   : > { %499 = shalt.err (!%p496_p8)
}
  0x74   : > { %343 = dma.vmem_to_hbm [thread:$0]  (%p740_p10), %s241_s27, 128, %s238_s26, %s227_s28  }
  0x75 PF: > { %p360_p11 = scmp.ge.s32.totalorder %s558_s14, 2  ;;  %s252_s16 = sand.u32 1, %s538_s9  }
  0x76   : > { %p741_p13 = scmp.ne.s32.totalorder %s736_s21, 0  ;;  %s253_s18 = scalar_lea.sflag [#allocation5], %s252_s16 }
  0x78   : > { %p353_p0 = pnand %p360_p11, %p741_p13 }
  0x7a   : > { %p354_p6 = pneg %p353_p0 }
  0x7c   : > { %533 = dma.done.wait (%p354_p6), %s253_s18, 128  }
  0x7d   : > { %535 = vsyncadd (%p354_p6), %s253_s18, 4294967168  ;;  %s17_s14 = sadd.s32 1, %s558_s14   ;;  %s742_s9 = smov %s542_s10 }
  0x7e   : > { %p14_p7 = scmp.ge.s32.totalorder %s17_s14, 4   ;;  %s743_s10 = smov %s546_s11 }
  0x7f   : > { %s744_s11 = smov %s634_s22  ;;  %s745_s12 = smov %s554_s13 }
  0x80   : > { %s746_s13 = smov %s748_s17  ;;  %16 = sbr.rel (!%p14_p7) target bundleno = 6 (0x6), region = 83 }
  0x85   :  { %258 = vsyncpa [#allocation4], 1 }
  0x86   :  { %260 = vsyncpa [#allocation4 + $0x1], 1 }
  0x87   :  { %261 = vsyncpa [#allocation7], 1 }
  0x88   :  { %262 = vsyncpa [#allocation5], 1 }
  0x89   :  { %264 = vsyncpa [#allocation5 + $0x1], 1 }

</bundles_post_ra>
